<compile_context>
chip_gen: v6e
topology: v6e:2x2x1
jax: 0.10.0
libtpu: 0.0.40
codegen_flags: <defaults>
</compile_context>

<pallas_src>
import functools

import jax
import jax.numpy as jnp
from jax.experimental import pallas as pl
from jax.experimental.pallas import tpu as pltpu


def _round_up(x, m):
    return ((x + m - 1) // m) * m


@functools.lru_cache(maxsize=None)
def _vmem_budget_bytes():
    """Per-generation VMEM budget used for tile sizing and vmem_limit_bytes."""
    try:
        cap = int(pltpu.get_tpu_info().vmem_capacity_bytes)
    except Exception:  # pragma: no cover - conservative fallback
        cap = 64 * 1024 * 1024
    if cap >= 96 * 1024 * 1024:          # v5e / v6e: 128 MiB physical VMEM
        return 80 * 1024 * 1024
    return 40 * 1024 * 1024              # v7x: 64 MiB physical (or unknown)


def _select_tiles(M, K, Cout, budget_bytes):
    """Pick (tm, tn, tk) and padded dims for the fused GEMM."""
    # N (output-channel) axis.
    tn = min(512, _round_up(Cout, 128))
    Np = _round_up(Cout, tn)
    # M (batch*spatial) axis.
    tm = min(512, _round_up(M, 16))       # multiple of 16 for bf16 packing
    Mp = _round_up(M, tm)
    # Megacore (v7x): if both parallel axes are degenerate, split N so both
    # TensorCores get a tile.  Harmless on single-TC chips.
    if (Mp // tm) == 1 and (Np // tn) == 1 and Np % 256 == 0:
        tn = Np // 2
    # K (reduction) axis.
    if K < 128 and K % 128 != 0:
        # Small K (layer 1: 48): single full-extent block, no 128 padding.
        Kp = _round_up(K, 16)
        tk = Kp
    else:
        kp128 = _round_up(K, 128)
        # Working set: 2*(p + w) bf16 double-buffered + 2*out bf16 + f32 acc.
        usable = int(budget_bytes * 0.8) - 8 * tm * tn - 64 * tn
        tk_budget = max(128, (usable // (4 * (tm + tn))) // 128 * 128)
        tk = min(kp128, 4096, tk_budget)
        Kp = _round_up(K, tk)
    return tm, tn, tk, Mp, Np, Kp


# ----------------------------------------------------------------------------
# Fused GEMM kernel: out = act((P @ W) * scale + shift)
# Grid = (M tiles, N tiles, K tiles); K (reduction) is the last, "arbitrary"
# axis; a f32 VMEM scratch holds the accumulator; output is stored in bf16.
# ----------------------------------------------------------------------------
def _fused_gemm_kernel(p_ref, w_ref, s_ref, t_ref, o_ref, acc_ref, *,
                       do_act, alpha):
    k = pl.program_id(2)

    prod = jnp.dot(p_ref[...], w_ref[...], preferred_element_type=jnp.float32)

    @pl.when(k == 0)
    def _():
        acc_ref[...] = prod

    @pl.when(k > 0)
    def _():
        acc_ref[...] += prod

    @pl.when(k == pl.num_programs(2) - 1)
    def _():
        # Folded affine: BatchNorm (eval mode) + conv bias (pre-folded into t).
        y = acc_ref[...] * s_ref[...] + t_ref[...]
        if do_act:                              # LeakyReLU(0.2)
            y = jnp.where(y >= 0.0, y, alpha * y)
        o_ref[...] = y.astype(o_ref.dtype)


def fused_conv_gemm(patches, weight_2d, scale, shift, *, do_act, alpha=0.2):
    """patches: [M, K] (bf16 ok), weight_2d: [K, Cout], scale/shift: [Cout]."""
    M, K = patches.shape
    Cout = weight_2d.shape[1]

    budget = _vmem_budget_bytes()
    tm, tn, tk, Mp, Np, Kp = _select_tiles(M, K, Cout, budget)

    # --- operand prep (bf16 for the MXU; pad only when needed) -----------
    p = patches.astype(jnp.bfloat16)
    if (Mp, Kp) != (M, K):
        p = jnp.pad(p, ((0, Mp - M), (0, Kp - K)))
    w = weight_2d.astype(jnp.bfloat16)
    if (Kp, Np) != (K, Cout):
        w = jnp.pad(w, ((0, Kp - K), (0, Np - Cout)))
    s = scale.reshape(1, Cout).astype(jnp.float32)
    t = shift.reshape(1, Cout).astype(jnp.float32)
    if Np != Cout:
        s = jnp.pad(s, ((0, 0), (0, Np - Cout)))
        t = jnp.pad(t, ((0, 0), (0, Np - Cout)))

    grid = (Mp // tm, Np // tn, Kp // tk)
    kernel = functools.partial(_fused_gemm_kernel, do_act=do_act, alpha=alpha)

    out = pl.pallas_call(
        kernel,
        out_shape=jax.ShapeDtypeStruct((Mp, Np), jnp.bfloat16),
        grid_spec=pltpu.PrefetchScalarGridSpec(
            num_scalar_prefetch=0,
            grid=grid,
            in_specs=[
                pl.BlockSpec((tm, tk), lambda m, n, k: (m, k)),
                pl.BlockSpec((tk, tn), lambda m, n, k: (k, n)),
                pl.BlockSpec((1, tn), lambda m, n, k: (0, n)),
                pl.BlockSpec((1, tn), lambda m, n, k: (0, n)),
            ],
            out_specs=pl.BlockSpec((tm, tn), lambda m, n, k: (m, n)),
            scratch_shapes=[pltpu.VMEM((tm, tn), jnp.float32)],
        ),
        compiler_params=pltpu.CompilerParams(
            dimension_semantics=("parallel", "parallel", "arbitrary"),
            vmem_limit_bytes=budget),
    )(p, w, s, t)
    return out[:M, :Cout]


# ----------------------------------------------------------------------------
# im2col glue (pure JAX, just data movement / reshapes); runs in bf16.
# ----------------------------------------------------------------------------
def _im2col(x_nhwc, ksize, stride, pad):
    N, H, W, C = x_nhwc.shape
    xp = jnp.pad(x_nhwc, ((0, 0), (pad, pad), (pad, pad), (0, 0)))
    Ho = (H + 2 * pad - ksize) // stride + 1
    Wo = (W + 2 * pad - ksize) // stride + 1
    cols = []
    for i in range(ksize):
        for j in range(ksize):
            cols.append(xp[:, i:i + stride * Ho:stride,
                           j:j + stride * Wo:stride, :])
    patches = jnp.concatenate(cols, axis=-1)  # [N, Ho, Wo, k*k*C]
    return patches.reshape(N * Ho * Wo, ksize * ksize * C), Ho, Wo


# ----------------------------------------------------------------------------
# Parameters (deterministic, synthetic init) and forward pass
# ----------------------------------------------------------------------------
_LAYERS = [  # (cin, cout, stride, has_bn)
    (None, 128, 2, False),
    (128, 256, 2, True),
    (256, 512, 2, True),
    (512, 1024, 2, True),
    (1024, 1, 1, False),
]


def init_discriminator_params(key, input_channels=3):
    params = []
    for li, (cin, cout, stride, has_bn) in enumerate(_LAYERS):
        cin = input_channels if cin is None else cin
        key, kw, kb, kg, kbe = jax.random.split(key, 5)
        w = 0.02 * jax.random.normal(kw, (cout, cin, 4, 4), jnp.float32)
        b = 0.02 * jax.random.normal(kb, (cout,), jnp.float32)
        if has_bn:
            gamma = 1.0 + 0.1 * jax.random.normal(kg, (cout,), jnp.float32)
            beta = 0.1 * jax.random.normal(kbe, (cout,), jnp.float32)
            running_mean = jnp.zeros((cout,), jnp.float32)
            running_var = jnp.ones((cout,), jnp.float32)
            bn = (gamma, beta, running_mean, running_var)
        else:
            bn = None
        params.append(dict(w=w, b=b, bn=bn, stride=stride))
    return params


def discriminator_forward(params, x_nchw):
    # NCHW in / NCHW out (PyTorch convention); bf16 NHWC + GEMM internally.
    x = jnp.transpose(x_nchw, (0, 2, 3, 1)).astype(jnp.bfloat16)
    eps = 1e-5
    n_layers = len(params)
    for li, p in enumerate(params):
        cout = p["w"].shape[0]
        patches, Ho, Wo = _im2col(x, 4, p["stride"], 1)
        # [Cout, Cin, kh, kw] -> [kh, kw, Cin, Cout] -> [kh*kw*Cin, Cout]
        w2d = jnp.transpose(p["w"], (2, 3, 1, 0)).reshape(-1, cout)
        if p["bn"] is not None:
            gamma, beta, rm, rv = p["bn"]
            scale = gamma / jnp.sqrt(rv + eps)
            shift = beta - rm * scale
        else:
            scale = jnp.ones((cout,), jnp.float32)
            shift = jnp.zeros((cout,), jnp.float32)
        # Fold conv bias into the affine shift: (acc + b)*s + t = acc*s + (b*s+t)
        shift = shift + p["b"] * scale
        do_act = li < n_layers - 1  # final conv has no activation
        y = fused_conv_gemm(patches, w2d, scale, shift, do_act=do_act,
                            alpha=0.2)                        # bf16 [M, Cout]
        x = y.reshape(x.shape[0], Ho, Wo, cout)               # stays bf16
    return jnp.transpose(x, (0, 3, 1, 2)).astype(jnp.float32)


# ----------------------------------------------------------------------------
# Pure-JAX reference (lax.conv, f32 HIGHEST) for a sanity check
# ----------------------------------------------------------------------------
def discriminator_reference(params, x_nchw):
    x = x_nchw.astype(jnp.float32)
    eps = 1e-5
    n_layers = len(params)
    for li, p in enumerate(params):
        x = jax.lax.conv_general_dilated(
            x, p["w"], window_strides=(p["stride"], p["stride"]),
            padding=((1, 1), (1, 1)),
            dimension_numbers=("NCHW", "OIHW", "NCHW"),
            precision=jax.lax.Precision.HIGHEST)
        x = x + p["b"][None, :, None, None]
        if p["bn"] is not None:
            gamma, beta, rm, rv = p["bn"]
            x = (x - rm[None, :, None, None]) / jnp.sqrt(
                rv[None, :, None, None] + eps)
            x = x * gamma[None, :, None, None] + beta[None, :, None, None]
        if li < n_layers - 1:
            x = jnp.where(x >= 0.0, x, 0.2 * x)
    return x


if __name__ == "__main__":
    key = jax.random.PRNGKey(0)
    kx, kp = jax.random.split(key)
    # 32x32 input so the final 4x4/stride-1 conv yields a valid 1x1 output.
    x = jax.random.normal(kx, (2, 3, 32, 32), jnp.float32)
    params = init_discriminator_params(kp, input_channels=3)

    out = discriminator_forward(params, x)
    out = jax.block_until_ready(out)
    assert out.shape == (2, 1, 1, 1), out.shape
    assert bool(jnp.all(jnp.isfinite(out)))

    ref = discriminator_reference(params, x)
    # bf16 MXU operands / bf16 inter-layer activations vs f32 HIGHEST
    # reference: allow ~2% deviation.
    assert bool(jnp.allclose(out, ref, rtol=2e-2, atol=2e-2)), (
        "mismatch vs reference: max abs err = "
        f"{float(jnp.max(jnp.abs(out - ref)))}")

    print("KERNEL_OK")
</pallas_src>

<mosaic_0001>
module attributes {stable_mosaic.version = 11 : i64} {
  func.func @_fused_gemm_kernel(%arg0: i32, %arg1: i32, %arg2: i32, %arg3: memref<512x48xbf16, #tpu.memory_space<vmem>>, %arg4: memref<48x128xbf16, #tpu.memory_space<vmem>>, %arg5: memref<1x128xf32, #tpu.memory_space<vmem>>, %arg6: memref<1x128xf32, #tpu.memory_space<vmem>>, %arg7: memref<512x128xbf16, #tpu.memory_space<vmem>>, %arg8: memref<512x128xf32, #tpu.memory_space<vmem>>) attributes {dimension_semantics = [#tpu.dimension_semantics<parallel>, #tpu.dimension_semantics<parallel>, #tpu.dimension_semantics<arbitrary>], iteration_bounds = array<i64: 1, 1, 1>, scalar_prefetch = 0 : i64, scratch_operands = 1 : i64, tpu.core_type = #tpu.core_type<tc>, window_params = [{transform_indices = @transform_0, window_bounds = array<i64: 512, 48>}, {transform_indices = @transform_1, window_bounds = array<i64: 48, 128>}, {transform_indices = @transform_2, window_bounds = array<i64: 1, 128>}, {transform_indices = @transform_3, window_bounds = array<i64: 1, 128>}, {transform_indices = @transform_4, window_bounds = array<i64: 512, 128>}]} {
    %c0 = arith.constant 0 : index
    %c0_0 = arith.constant 0 : index
    %0 = vector.load %arg3[%c0, %c0_0] : memref<512x48xbf16, #tpu.memory_space<vmem>>, vector<512x48xbf16>
    %c0_1 = arith.constant 0 : index
    %c0_2 = arith.constant 0 : index
    %1 = vector.load %arg4[%c0_1, %c0_2] : memref<48x128xbf16, #tpu.memory_space<vmem>>, vector<48x128xbf16>
    %cst = arith.constant dense<0.000000e+00> : vector<512x128xf32>
    %2 = tpu.matmul %0, %1, %cst {dimension_numbers = #tpu.dot_dimension_numbers<[1], [0], [0], [1], [0, 0, 1, 1], [], []>} : vector<512x48xbf16>, vector<48x128xbf16>, vector<512x128xf32> -> vector<512x128xf32>
    %c0_i32 = arith.constant 0 : i32
    %3 = arith.cmpi eq, %arg2, %c0_i32 : i32
    %4 = arith.extui %3 : i1 to i32
    %c0_i32_3 = arith.constant 0 : i32
    %5 = arith.cmpi ne, %4, %c0_i32_3 : i32
    scf.if %5 {
      %c0_8 = arith.constant 0 : index
      %c0_9 = arith.constant 0 : index
      %12 = vector.load %arg8[%c0_8, %c0_9] : memref<512x128xf32, #tpu.memory_space<vmem>>, vector<512x128xf32>
      tpu.vector_store %arg8[%c0_8, %c0_9], %2 {strides = array<i32>} : memref<512x128xf32, #tpu.memory_space<vmem>>, vector<512x128xf32>,
    } else {
    }
    %c0_i32_4 = arith.constant 0 : i32
    %6 = arith.cmpi sgt, %arg2, %c0_i32_4 : i32
    %7 = arith.extui %6 : i1 to i32
    %c0_i32_5 = arith.constant 0 : i32
    %8 = arith.cmpi ne, %7, %c0_i32_5 : i32
    scf.if %8 {
      %c0_8 = arith.constant 0 : index
      %c0_9 = arith.constant 0 : index
      %12 = vector.load %arg8[%c0_8, %c0_9] : memref<512x128xf32, #tpu.memory_space<vmem>>, vector<512x128xf32>
      %13 = arith.addf %12, %2 : vector<512x128xf32>
      %c0_10 = arith.constant 0 : index
      %c0_11 = arith.constant 0 : index
      %14 = vector.load %arg8[%c0_10, %c0_11] : memref<512x128xf32, #tpu.memory_space<vmem>>, vector<512x128xf32>
      tpu.vector_store %arg8[%c0_10, %c0_11], %13 {strides = array<i32>} : memref<512x128xf32, #tpu.memory_space<vmem>>, vector<512x128xf32>,
    } else {
    }
    %c0_i32_6 = arith.constant 0 : i32
    %9 = arith.cmpi eq, %arg2, %c0_i32_6 : i32
    %10 = arith.extui %9 : i1 to i32
    %c0_i32_7 = arith.constant 0 : i32
    %11 = arith.cmpi ne, %10, %c0_i32_7 : i32
    scf.if %11 {
      %c0_8 = arith.constant 0 : index
      %c0_9 = arith.constant 0 : index
      %12 = vector.load %arg8[%c0_8, %c0_9] : memref<512x128xf32, #tpu.memory_space<vmem>>, vector<512x128xf32>
      %c0_10 = arith.constant 0 : index
      %c0_11 = arith.constant 0 : index
      %13 = vector.load %arg5[%c0_10, %c0_11] : memref<1x128xf32, #tpu.memory_space<vmem>>, vector<1x128xf32>
      %14 = vector.broadcast %13 : vector<1x128xf32> to vector<512x128xf32>
      %15 = arith.mulf %12, %14 : vector<512x128xf32>
      %c0_12 = arith.constant 0 : index
      %c0_13 = arith.constant 0 : index
      %16 = vector.load %arg6[%c0_12, %c0_13] : memref<1x128xf32, #tpu.memory_space<vmem>>, vector<1x128xf32>
      %17 = vector.broadcast %16 : vector<1x128xf32> to vector<512x128xf32>
      %18 = arith.addf %15, %17 : vector<512x128xf32>
      %cst_14 = arith.constant 0.000000e+00 : f32
      %19 = vector.broadcast %cst_14 : f32 to vector<512x128xf32>
      %20 = arith.cmpf oge, %18, %19 : vector<512x128xf32>
      %cst_15 = arith.constant 2.000000e-01 : f32
      %21 = vector.broadcast %cst_15 : f32 to vector<512x128xf32>
      %22 = arith.mulf %21, %18 : vector<512x128xf32>
      %23 = arith.select %20, %18, %22 : vector<512x128xi1>, vector<512x128xf32>
      %24 = arith.truncf %23 : vector<512x128xf32> to vector<512x128xbf16>
      %c0_16 = arith.constant 0 : index
      %c0_17 = arith.constant 0 : index
      %25 = vector.load %arg7[%c0_16, %c0_17] : memref<512x128xbf16, #tpu.memory_space<vmem>>, vector<512x128xbf16>
      tpu.vector_store %arg7[%c0_16, %c0_17], %24 {strides = array<i32>} : memref<512x128xbf16, #tpu.memory_space<vmem>>, vector<512x128xbf16>,
    } else {
    }
    return
  }
  func.func @transform_0(%arg0: i32, %arg1: i32, %arg2: i32) -> (i32, i32) {
    %c0_i32 = arith.constant 0 : i32
    return %arg0, %arg2 : i32, i32
  }
  func.func @transform_1(%arg0: i32, %arg1: i32, %arg2: i32) -> (i32, i32) {
    %c0_i32 = arith.constant 0 : i32
    return %arg2, %arg1 : i32, i32
  }
  func.func @transform_2(%arg0: i32, %arg1: i32, %arg2: i32) -> (i32, i32) {
    %c0_i32 = arith.constant 0 : i32
    %c0_i32_0 = arith.constant 0 : i32
    return %c0_i32, %arg1 : i32, i32
  }
  func.func @transform_3(%arg0: i32, %arg1: i32, %arg2: i32) -> (i32, i32) {
    %c0_i32 = arith.constant 0 : i32
    %c0_i32_0 = arith.constant 0 : i32
    return %c0_i32, %arg1 : i32, i32
  }
  func.func @transform_4(%arg0: i32, %arg1: i32, %arg2: i32) -> (i32, i32) {
    %c0_i32 = arith.constant 0 : i32
    return %arg0, %arg1 : i32, i32
  }
}

</mosaic_0001>

<bundles_post_ra>
// kernel: tpu_custom_call.1
= control target key start
LH: loop header
LB: loop body
LE: loop exit
PB: predicated region body
PF: predicated region fallthrough
CT: control target
= control target key end

     0   :  { %vm267_vm0 = vcmask 392192   ;;  %s2564_s0 = inlined_call_operand.vmem [shape: bf16[512,48], index: 0, kind: input, shape index: {}]   ;;  %s2565_s1 = inlined_call_operand.vmem [shape: bf16[48,128], index: 1, kind: input, shape index: {}]   ;;  %s2566_s2 = inlined_call_operand.vmem [shape: f32[1,128], index: 2, kind: input, shape index: {}]   ;;  %s2567_s3 = inlined_call_operand.vmem [shape: f32[1,128], index: 3, kind: input, shape index: {}]   ;;  %s2568_s4 = inlined_call_operand.hbm [shape: bf16[512,128], index: 4, kind: output, shape index: {}]  }
   0x1   :  { %v2156_v0 = vld [vmem:[%s2565_s1 + $0x10] sm:$0xff]   ;;  %v2157_v1 = vld [vmem:[%s2565_s1 + $0x8] sm:$0xff]   ;;  %v2158_v2 = vld [vmem:[%s2565_s1] sm:$0xff]  }
   0x2   :  { %2077 = vmatprep.subr.bf16.mxu0 %v2156_v0  ;;  %2147 = vmatprep.subr.bf16.mxu1 %v2156_v0  ;;  %v2159_v3 = vld [vmem:[%s2564_s0] sm:$0xff]   ;;  %v2161_v5 = vld [vmem:[%s2564_s0 + $0x8] sm:$0xff]   ;;  %v2163_v7 = vld [vmem:[%s2564_s0 + $0x10] sm:$0xff]  }
   0x3   :  { %2078 = vmatpush3.bf16.msra.mxu0 %v2156_v0  ;;  %2150 = vmatpush3.bf16.msra.mxu1 %v2156_v0  ;;  %v2160_v4 = vld [vmem:[%s2564_s0 + $0x80] sm:$0xff]   ;;  %v2162_v6 = vld [vmem:[%s2564_s0 + $0x88] sm:$0xff]   ;;  %v2164_v8 = vld [vmem:[%s2564_s0 + $0x90] sm:$0xff]  }
   0x4   :  { %2079 = vmatprep.subr.bf16.mxu0 %v2157_v1  ;;  %2148 = vmatprep.subr.bf16.mxu1 %v2157_v1  ;;  %v2165_v9 = vld [vmem:[%s2564_s0 + $0x18] sm:$0xff]   ;;  %v2167_v11 = vld [vmem:[%s2564_s0 + $0x20] sm:$0xff]   ;;  %v2169_v13 = vld [vmem:[%s2564_s0 + $0x28] sm:$0xff]  }
   0x5   :  { %2083 = vmatprep.mubr.msk.bf16.mxu0 %vm267_vm0, %v2159_v3  ;;  %2115 = vmatprep.mubr.msk.bf16.mxu1 %vm267_vm0, %v2160_v4  ;;  %v2166_v10 = vld [vmem:[%s2564_s0 + $0x98] sm:$0xff]   ;;  %v2168_v12 = vld [vmem:[%s2564_s0 + $0xa0] sm:$0xff]   ;;  %v2170_v14 = vld [vmem:[%s2564_s0 + $0xa8] sm:$0xff]  }
   0x6   :  { %v2171_v15 = vld [vmem:[%s2564_s0 + $0x30] sm:$0xff]   ;;  %v2173_v17 = vld [vmem:[%s2564_s0 + $0x38] sm:$0xff]   ;;  %v2175_v19 = vld [vmem:[%s2564_s0 + $0x40] sm:$0xff]  }
   0x7   :  { %2080 = vmatpush3.bf16.msra.mxu0 %v2157_v1  ;;  %2151 = vmatpush3.bf16.msra.mxu1 %v2157_v1  ;;  %v2172_v16 = vld [vmem:[%s2564_s0 + $0xb0] sm:$0xff]   ;;  %v2174_v18 = vld [vmem:[%s2564_s0 + $0xb8] sm:$0xff]   ;;  %v2176_v20 = vld [vmem:[%s2564_s0 + $0xc0] sm:$0xff]  }
   0x8   :  { %2081 = vmatprep.subr.bf16.mxu0 %v2158_v2  ;;  %2149 = vmatprep.subr.bf16.mxu1 %v2158_v2 }
   0xb   :  { %2082 = vmatpush3.bf16.msra.mxu0 %v2158_v2  ;;  %2152 = vmatpush3.bf16.msra.mxu1 %v2158_v2 }
   0xe   :  { %2084 = vmatmul.mubr.msk.bf16.vlgmr.msra.gmra.mxu0 %vm267_vm0, %v2161_v5  ;;  %2116 = vmatmul.mubr.msk.bf16.vlgmr.msra.gmra.mxu1 %vm267_vm0, %v2162_v6 }
   0xf   :  { %2087 = vmatprep.mubr.msk.bf16.mxu0 %vm267_vm0, %v2163_v7  ;;  %2119 = vmatprep.mubr.msk.bf16.mxu1 %vm267_vm0, %v2164_v8 }
  0x16   :  { %2088 = vmatmul.mubr.msk.bf16.gmra.mxu0 %vm267_vm0, %v2165_v9  ;;  %2120 = vmatmul.mubr.msk.bf16.gmra.mxu1 %vm267_vm0, %v2166_v10 }
  0x17   :  { %2091 = vmatprep.mubr.msk.bf16.mxu0 %vm267_vm0, %v2167_v11  ;;  %2123 = vmatprep.mubr.msk.bf16.mxu1 %vm267_vm0, %v2168_v12 }
  0x1e   :  { %2092 = vmatmul.mubr.msk.bf16.gmra.mxu0 %vm267_vm0, %v2169_v13  ;;  %2124 = vmatmul.mubr.msk.bf16.gmra.mxu1 %vm267_vm0, %v2170_v14 }
  0x1f   :  { %2095 = vmatprep.mubr.msk.bf16.mxu0 %vm267_vm0, %v2171_v15  ;;  %2127 = vmatprep.mubr.msk.bf16.mxu1 %vm267_vm0, %v2172_v16 }
  0x20   :  { %9 = vsyncpa [#allocation4], 0  ;;  %v2177_v21 = vld [vmem:[%s2564_s0 + $0x48] sm:$0xff]   ;;  %v2179_v23 = vld [vmem:[%s2564_s0 + $0x50] sm:$0xff]  }
  0x21   :  { %v2178_v22 = vld [vmem:[%s2564_s0 + $0xc8] sm:$0xff]   ;;  %v2180_v24 = vld [vmem:[%s2564_s0 + $0xd0] sm:$0xff]   ;;  %v2181_v25 = vld [vmem:[%s2564_s0 + $0x58] sm:$0xff]  }
  0x22   :  { %v2182_v26 = vld [vmem:[%s2564_s0 + $0xd8] sm:$0xff]   ;;  %v2183_v27 = vld [vmem:[%s2564_s0 + $0x60] sm:$0xff]   ;;  %v2185_v29 = vld [vmem:[%s2564_s0 + $0x68] sm:$0xff]  }
  0x23   :  { %v2184_v28 = vld [vmem:[%s2564_s0 + $0xe0] sm:$0xff]   ;;  %v2186_v30 = vld [vmem:[%s2564_s0 + $0xe8] sm:$0xff]   ;;  %v2187_v31 = vld [vmem:[%s2564_s0 + $0x70] sm:$0xff]  }
  0x24   :  { %v2188_v32 = vld [vmem:[%s2564_s0 + $0xf0] sm:$0xff]   ;;  %v2189_v33 = vld [vmem:[%s2564_s0 + $0x78] sm:$0xff]   ;;  %v2381_v35 = vld [vmem:[%s2566_s2] ss:$0 sm:$0xff] }
  0x25   :  { %v2190_v34 = vld [vmem:[%s2564_s0 + $0xf8] sm:$0xff]   ;;  %v2386_v37 = vld [vmem:[%s2567_s3] ss:$0 sm:$0xff]  ;;  %s2213_s0 = smov [#allocation3]  }
  0x26   :  { %2096 = vmatmul.mubr.msk.bf16.gmra.mxu0 %vm267_vm0, %v2173_v17  ;;  %2128 = vmatmul.mubr.msk.bf16.gmra.mxu1 %vm267_vm0, %v2174_v18  ;;  %s1643_s2 = sshll.u32 %s2213_s0, 4  ;;  %s1644_s2 = int_to_ptr.vmem [resolvable:$true] %s1643_s2 }
  0x27   :  { %2099 = vmatprep.mubr.msk.bf16.mxu0 %vm267_vm0, %v2175_v19  ;;  %2131 = vmatprep.mubr.msk.bf16.mxu1 %vm267_vm0, %v2176_v20  ;;  %s2191_s3 = scalar_lea.vmem %s1644_s2, 4096  ;;  %p2196_p1 = scmp.lt.s32.totalorder %s1644_s2, %s1644_s2 }
  0x28   :  { %p2192_p0 = scmp.ne.s32.totalorder %s1644_s2, %s2191_s3  ;;  %p2197_p2 = scmp.lt.s32.totalorder %s2191_s3, %s2191_s3 }
  0x2a   :  { %p2198_p3 = por %p2197_p2, %p2196_p1 }
  0x2c   :  { %p2199_p4 = pnand %p2198_p3, %p2192_p0 }
  0x2e   :  { %2100 = vmatmul.mubr.msk.bf16.gmra.mxu0 %vm267_vm0, %v2177_v21  ;;  %2132 = vmatmul.mubr.msk.bf16.gmra.mxu1 %vm267_vm0, %v2178_v22 }
  0x2f   :  { %2103 = vmatprep.mubr.msk.bf16.mxu0 %vm267_vm0, %v2179_v23  ;;  %2135 = vmatprep.mubr.msk.bf16.mxu1 %vm267_vm0, %v2180_v24 }
  0x36   :  { %2104 = vmatmul.mubr.msk.bf16.gmra.mxu0 %vm267_vm0, %v2181_v25  ;;  %2136 = vmatmul.mubr.msk.bf16.gmra.mxu1 %vm267_vm0, %v2182_v26 }
  0x37   :  { %2107 = vmatprep.mubr.msk.bf16.mxu0 %vm267_vm0, %v2183_v27  ;;  %2139 = vmatprep.mubr.msk.bf16.mxu1 %vm267_vm0, %v2184_v28 }
  0x3e   :  { %2108 = vmatmul.mubr.msk.bf16.gmra.mxu0 %vm267_vm0, %v2185_v29  ;;  %2140 = vmatmul.mubr.msk.bf16.gmra.mxu1 %vm267_vm0, %v2186_v30 }
  0x3f   :  { %2111 = vmatprep.mubr.msk.bf16.mxu0 %vm267_vm0, %v2187_v31  ;;  %2143 = vmatprep.mubr.msk.bf16.mxu1 %vm267_vm0, %v2188_v32 }
  0x46   :  { %2112 = vmatmul.mubr.msk.bf16.gmra.mxu0 %vm267_vm0, %v2189_v33  ;;  %2144 = vmatmul.mubr.msk.bf16.gmra.mxu1 %vm267_vm0, %v2190_v34 }
  0xce   :  { %v2085_v36 = vpop.f32.mrf.mxu0  ;;  %v2117_v38 = vpop.f32.mrf.mxu1 }
  0xcf   :  { %v993_v39 = vmul.f32 %v2085_v36, %v2381_v35  ;;  %v1025_v40 = vmul.f32 %v2117_v38, %v2381_v35 }
  0xd0   :  { %v398_v41 = vpop.f32.mrf.mxu0  ;;  %v526_v42 = vpop.f32.mrf.mxu1 }
  0xd1   :  { %v1064_v43 = vadd.f32 %v2386_v37, %v993_v39  ;;  %v1096_v44 = vadd.f32 %v2386_v37, %v1025_v40  ;;  %v991_v45 = vmul.f32 %v2381_v35, %v398_v41  ;;  %v1023_v46 = vmul.f32 %v2381_v35, %v526_v42 }
  0xd2   :  { %v2086_v47 = vpop.f32.mrf.mxu0  ;;  %v2118_v48 = vpop.f32.mrf.mxu1 }
  0xd3   :  { %vm1128_vm1 = vcmp.ge.f32.partialorder %v1064_v43, 0.0  ;;  %v1192_v49 = vmul.f32 0.2, %v1064_v43  ;;  %vm1160_vm2 = vcmp.ge.f32.partialorder %v1096_v44, 0.0  ;;  %v1224_v50 = vmul.f32 0.2, %v1096_v44 }
  0xd4   :  { %v1062_v51 = vadd.f32 %v2386_v37, %v991_v45  ;;  %v1094_v52 = vadd.f32 %v2386_v37, %v1023_v46  ;;  %v994_v53 = vmul.f32 %v2086_v47, %v2381_v35  ;;  %v1026_v54 = vmul.f32 %v2118_v48, %v2381_v35  ;;  %v401_v55 = vpop.f32.mrf.mxu0  ;;  %v529_v56 = vpop.f32.mrf.mxu1 }
  0xd5   :  { %v1256_v57 = vsel %vm1128_vm1, %v1064_v43, %v1192_v49  ;;  %v1288_v58 = vsel %vm1160_vm2, %v1096_v44, %v1224_v50  ;;  %v992_v59 = vmul.f32 %v2381_v35, %v401_v55  ;;  %v1024_v60 = vmul.f32 %v2381_v35, %v529_v56 }
  0xd6   :  { %vm1126_vm3 = vcmp.ge.f32.partialorder %v1062_v51, 0.0  ;;  %v1190_v61 = vmul.f32 0.2, %v1062_v51  ;;  %vm1158_vm4 = vcmp.ge.f32.partialorder %v1094_v52, 0.0  ;;  %v1222_v62 = vmul.f32 0.2, %v1094_v52  ;;  %v2089_v63 = vpop.f32.mrf.mxu0  ;;  %v2121_v0 = vpop.f32.mrf.mxu1 }
  0xd7   :  { %v1065_v1 = vadd.f32 %v2386_v37, %v994_v53  ;;  %v1097_v2 = vadd.f32 %v2386_v37, %v1026_v54  ;;  %v1063_v3 = vadd.f32 %v2386_v37, %v992_v59  ;;  %v1095_v4 = vadd.f32 %v2386_v37, %v1024_v60 }
  0xd8   :  { %v1254_v5 = vsel %vm1126_vm3, %v1062_v51, %v1190_v61  ;;  %v1286_v6 = vsel %vm1158_vm4, %v1094_v52, %v1222_v62  ;;  %v997_v7 = vmul.f32 %v2089_v63, %v2381_v35  ;;  %v1029_v8 = vmul.f32 %v2121_v0, %v2381_v35  ;;  %v414_v9 = vpop.f32.mrf.mxu0  ;;  %v542_v10 = vpop.f32.mrf.mxu1 }
  0xd9   :  { %vm1129_vm5 = vcmp.ge.f32.partialorder %v1065_v1, 0.0  ;;  %v1193_v11 = vmul.f32 0.2, %v1065_v1  ;;  %vm1161_vm6 = vcmp.ge.f32.partialorder %v1097_v2, 0.0  ;;  %v1225_v12 = vmul.f32 0.2, %v1097_v2 }
  0xda   :  { %vm1127_vm7 = vcmp.ge.f32.partialorder %v1063_v3, 0.0  ;;  %v1191_v13 = vmul.f32 0.2, %v1063_v3  ;;  %vm1159_vm8 = vcmp.ge.f32.partialorder %v1095_v4, 0.0  ;;  %v1223_v14 = vmul.f32 0.2, %v1095_v4  ;;  %v2090_v15 = vpop.f32.mrf.mxu0  ;;  %v2122_v16 = vpop.f32.mrf.mxu1 }
  0xdb   :  { %v1257_v17 = vsel %vm1129_vm5, %v1065_v1, %v1193_v11  ;;  %v1289_v18 = vsel %vm1161_vm6, %v1097_v2, %v1225_v12  ;;  %v1068_v19 = vadd.f32 %v2386_v37, %v997_v7  ;;  %v1100_v20 = vadd.f32 %v2386_v37, %v1029_v8 }
  0xdc   :  { %v1859_v21 = vpack.c.bf16 %v1257_v17, %v1256_v57  ;;  %v1939_v22 = vpack.c.bf16 %v1289_v18, %v1288_v58  ;;  %v1255_v23 = vsel %vm1127_vm7, %v1063_v3, %v1191_v13  ;;  %v1287_v24 = vsel %vm1159_vm8, %v1095_v4, %v1223_v14  ;;  %v417_v25 = vpop.f32.mrf.mxu0  ;;  %v545_v26 = vpop.f32.mrf.mxu1 }
  0xdd   :  { %v1854_v27 = vpack.c.bf16 %v1255_v23, %v1254_v5  ;;  %v1934_v28 = vpack.c.bf16 %v1287_v24, %v1286_v6  ;;  %vm1132_vm9 = vcmp.ge.f32.partialorder %v1068_v19, 0.0  ;;  %v1196_v29 = vmul.f32 0.2, %v1068_v19 }
  0xde   :  { %2011 = vst [vmem:[#allocation3 + $0x8] sm:$0xff] %v1859_v21   ;;  %2027 = vst [vmem:[#allocation3 + $0x88] sm:$0xff] %v1939_v22   ;;  %vm1164_vm10 = vcmp.ge.f32.partialorder %v1100_v20, 0.0  ;;  %v1228_v30 = vmul.f32 0.2, %v1100_v20  ;;  %v995_v31 = vmul.f32 %v2381_v35, %v414_v9  ;;  %v1027_v32 = vmul.f32 %v2381_v35, %v542_v10  ;;  %v2093_v33 = vpop.f32.mrf.mxu0  ;;  %v2125_v34 = vpop.f32.mrf.mxu1 }
  0xdf   :  { %1855 = vst [vmem:[#allocation3] sm:$0xff] %v1854_v27   ;;  %2026 = vst [vmem:[#allocation3 + $0x80] sm:$0xff] %v1934_v28   ;;  %v1260_v36 = vsel %vm1132_vm9, %v1068_v19, %v1196_v29  ;;  %v998_v38 = vmul.f32 %v2090_v15, %v2381_v35  ;;  %v1030_v39 = vmul.f32 %v2122_v16, %v2381_v35 }
  0xe0   :  { %v996_v40 = vmul.f32 %v2381_v35, %v417_v25  ;;  %v1292_v41 = vsel %vm1164_vm10, %v1100_v20, %v1228_v30  ;;  %v1066_v42 = vadd.f32 %v2386_v37, %v995_v31  ;;  %v1098_v43 = vadd.f32 %v2386_v37, %v1027_v32  ;;  %v430_v45 = vpop.f32.mrf.mxu0  ;;  %v558_v46 = vpop.f32.mrf.mxu1 }
  0xe1   :  { %v1028_v44 = vmul.f32 %v2381_v35, %v545_v26  ;;  %v1069_v47 = vadd.f32 %v2386_v37, %v998_v38  ;;  %v1101_v48 = vadd.f32 %v2386_v37, %v1030_v39  ;;  %v1001_v50 = vmul.f32 %v2093_v33, %v2381_v35 }
  0xe2   :  { %v1067_v49 = vadd.f32 %v2386_v37, %v996_v40  ;;  %vm1130_vm11 = vcmp.ge.f32.partialorder %v1066_v42, 0.0  ;;  %v1194_v51 = vmul.f32 0.2, %v1066_v42  ;;  %vm1162_vm12 = vcmp.ge.f32.partialorder %v1098_v43, 0.0  ;;  %v2094_v53 = vpop.f32.mrf.mxu0  ;;  %v2126_v54 = vpop.f32.mrf.mxu1 }
  0xe3   :  { %v1226_v52 = vmul.f32 0.2, %v1098_v43  ;;  %vm1133_vm13 = vcmp.ge.f32.partialorder %v1069_v47, 0.0  ;;  %v1197_v55 = vmul.f32 0.2, %v1069_v47  ;;  %vm1165_vm14 = vcmp.ge.f32.partialorder %v1101_v48, 0.0 }
  0xe4   :  { %v1229_v56 = vmul.f32 0.2, %v1101_v48  ;;  %v1258_v57 = vsel %vm1130_vm11, %v1066_v42, %v1194_v51  ;;  %vm1131_vm15 = vcmp.ge.f32.partialorder %v1067_v49, 0.0  ;;  %v1195_v59 = vmul.f32 0.2, %v1067_v49  ;;  %v433_v60 = vpop.f32.mrf.mxu0  ;;  %v561_v61 = vpop.f32.mrf.mxu1 }
  0xe5   :  { %v1290_v58 = vsel %vm1162_vm12, %v1098_v43, %v1226_v52  ;;  %v1261_v62 = vsel %vm1133_vm13, %v1069_v47, %v1197_v55  ;;  %v1099_v0 = vadd.f32 %v2386_v37, %v1028_v44  ;;  %v1072_v1 = vadd.f32 %v2386_v37, %v1001_v50 }
  0xe6   :  { %v1293_v63 = vsel %vm1165_vm14, %v1101_v48, %v1229_v56  ;;  %v1869_v2 = vpack.c.bf16 %v1261_v62, %v1260_v36  ;;  %v1259_v4 = vsel %vm1131_vm15, %v1067_v49, %v1195_v59  ;;  %v1033_v5 = vmul.f32 %v2125_v34, %v2381_v35  ;;  %v2097_v6 = vpop.f32.mrf.mxu0  ;;  %v2129_v7 = vpop.f32.mrf.mxu1 }
  0xe7   :  { %v1949_v3 = vpack.c.bf16 %v1293_v63, %v1292_v41  ;;  %v1864_v8 = vpack.c.bf16 %v1259_v4, %v1258_v57  ;;  %vm1163_vm0 = vcmp.ge.f32.partialorder %v1099_v0, 0.0  ;;  %v1227_v9 = vmul.f32 0.2, %v1099_v0 }
  0xe8   :  { %vm1136_vm1 = vcmp.ge.f32.partialorder %v1072_v1, 0.0  ;;  %2013 = vst [vmem:[#allocation3 + $0x18] sm:$0xff] %v1869_v2   ;;  %v1200_v10 = vmul.f32 0.2, %v1072_v1  ;;  %v1104_v11 = vadd.f32 %v2386_v37, %v1033_v5  ;;  %v999_v12 = vmul.f32 %v2381_v35, %v430_v45  ;;  %v446_v14 = vpop.f32.mrf.mxu0  ;;  %v574_v15 = vpop.f32.mrf.mxu1 }
  0xe9   :  { %2029 = vst [vmem:[#allocation3 + $0x98] sm:$0xff] %v1949_v3   ;;  %v1031_v13 = vmul.f32 %v2381_v35, %v558_v46  ;;  %2012 = vst [vmem:[#allocation3 + $0x10] sm:$0xff] %v1864_v8   ;;  %v1291_v16 = vsel %vm1163_vm0, %v1099_v0, %v1227_v9  ;;  %v1002_v17 = vmul.f32 %v2094_v53, %v2381_v35 }
  0xea   :  { %v1034_v18 = vmul.f32 %v2126_v54, %v2381_v35  ;;  %v1000_v19 = vmul.f32 %v2381_v35, %v433_v60  ;;  %v1944_v20 = vpack.c.bf16 %v1291_v16, %v1290_v58  ;;  %v1264_v21 = vsel %vm1136_vm1, %v1072_v1, %v1200_v10  ;;  %v2098_v23 = vpop.f32.mrf.mxu0  ;;  %v2130_v24 = vpop.f32.mrf.mxu1 }
  0xeb   :  { %vm1168_vm2 = vcmp.ge.f32.partialorder %v1104_v11, 0.0  ;;  %v1232_v22 = vmul.f32 0.2, %v1104_v11  ;;  %v1070_v25 = vadd.f32 %v2386_v37, %v999_v12  ;;  %v1102_v26 = vadd.f32 %v2386_v37, %v1031_v13 }
  0xec   :  { %v1073_v27 = vadd.f32 %v2386_v37, %v1002_v17  ;;  %v1105_v28 = vadd.f32 %v2386_v37, %v1034_v18  ;;  %2028 = vst [vmem:[#allocation3 + $0x90] sm:$0xff] %v1944_v20   ;;  %v1071_v30 = vadd.f32 %v2386_v37, %v1000_v19  ;;  %v1032_v31 = vmul.f32 %v2381_v35, %v561_v61  ;;  %v449_v33 = vpop.f32.mrf.mxu0  ;;  %v577_v34 = vpop.f32.mrf.mxu1 }
  0xed   :  { %v1296_v29 = vsel %vm1168_vm2, %v1104_v11, %v1232_v22  ;;  %v1005_v32 = vmul.f32 %v2097_v6, %v2381_v35  ;;  %vm1134_vm3 = vcmp.ge.f32.partialorder %v1070_v25, 0.0  ;;  %v1198_v36 = vmul.f32 0.2, %v1070_v25 }
  0xee   :  { %vm1166_vm4 = vcmp.ge.f32.partialorder %v1102_v26, 0.0  ;;  %v1230_v38 = vmul.f32 0.2, %v1102_v26  ;;  %vm1137_vm5 = vcmp.ge.f32.partialorder %v1073_v27, 0.0  ;;  %v1201_v39 = vmul.f32 0.2, %v1073_v27  ;;  %v2101_v41 = vpop.f32.mrf.mxu0  ;;  %v2436_v42 = vpop.f32.mrf.mxu1 }
  0xef   :  { %vm1169_vm6 = vcmp.ge.f32.partialorder %v1105_v28, 0.0  ;;  %v1233_v40 = vmul.f32 0.2, %v1105_v28  ;;  %v1262_v43 = vsel %vm1134_vm3, %v1070_v25, %v1198_v36  ;;  %vm1135_vm7 = vcmp.ge.f32.partialorder %v1071_v30, 0.0 }
  0xf0   :  { %v1294_v44 = vsel %vm1166_vm4, %v1102_v26, %v1230_v38  ;;  %v1199_v45 = vmul.f32 0.2, %v1071_v30  ;;  %v1265_v46 = vsel %vm1137_vm5, %v1073_v27, %v1201_v39  ;;  %v1103_v48 = vadd.f32 %v2386_v37, %v1032_v31  ;;  %v2440_v50 = vpop.f32.mrf.mxu0  ;;  %v2442_v51 = vpop.f32.mrf.mxu1 }
  0xf1   :  { %v1297_v47 = vsel %vm1169_vm6, %v1105_v28, %v1233_v40  ;;  %v1076_v49 = vadd.f32 %v2386_v37, %v1005_v32  ;;  %v1879_v52 = vpack.c.bf16 %v1265_v46, %v1264_v21  ;;  %v1037_v55 = vmul.f32 %v2129_v7, %v2381_v35 }
  0xf2   :  { %v1959_v53 = vpack.c.bf16 %v1297_v47, %v1296_v29  ;;  %v1263_v54 = vsel %vm1135_vm7, %v1071_v30, %v1199_v45  ;;  %vm1167_vm8 = vcmp.ge.f32.partialorder %v1103_v48, 0.0  ;;  %v1231_v57 = vmul.f32 0.2, %v1103_v48  ;;  %v2445_v58 = vpop.f32.mrf.mxu0  ;;  %v2447_v59 = vpop.f32.mrf.mxu1 }
  0xf3   :  { %v1874_v56 = vpack.c.bf16 %v1263_v54, %v1262_v43  ;;  %vm1140_vm9 = vcmp.ge.f32.partialorder %v1076_v49, 0.0  ;;  %2015 = vst [vmem:[#allocation3 + $0x28] sm:$0xff] %v1879_v52   ;;  %v1204_v60 = vmul.f32 0.2, %v1076_v49  ;;  %v1108_v61 = vadd.f32 %v2386_v37, %v1037_v55 }
  0xf4   :  { %2031 = vst [vmem:[#allocation3 + $0xa8] sm:$0xff] %v1959_v53   ;;  %v1003_v62 = vmul.f32 %v2381_v35, %v446_v14  ;;  %v1035_v63 = vmul.f32 %v2381_v35, %v574_v15  ;;  %v1295_v0 = vsel %vm1167_vm8, %v1103_v48, %v1231_v57  ;;  %v1006_v1 = vmul.f32 %v2098_v23, %v2381_v35  ;;  %v465_v4 = vpop.f32.mrf.mxu0  ;;  %v2455_v5 = vpop.f32.mrf.mxu1 }
  0xf5   :  { %2014 = vst [vmem:[#allocation3 + $0x20] sm:$0xff] %v1874_v56   ;;  %v1038_v2 = vmul.f32 %v2130_v24, %v2381_v35  ;;  %v1004_v3 = vmul.f32 %v2381_v35, %v449_v33  ;;  %v1954_v6 = vpack.c.bf16 %v1295_v0, %v1294_v44  ;;  %v1268_v7 = vsel %vm1140_vm9, %v1076_v49, %v1204_v60 }
  0xf6   :  { %vm1172_vm10 = vcmp.ge.f32.partialorder %v1108_v61, 0.0  ;;  %v1236_v8 = vmul.f32 0.2, %v1108_v61  ;;  %v1074_v9 = vadd.f32 %v2386_v37, %v1003_v62  ;;  %v1106_v10 = vadd.f32 %v2386_v37, %v1035_v63  ;;  %v2105_v13 = vpop.f32.mrf.mxu0  ;;  %v2462_v14 = vpop.f32.mrf.mxu1 }
  0xf7   :  { %v1077_v11 = vadd.f32 %v2386_v37, %v1006_v1  ;;  %v1109_v12 = vadd.f32 %v2386_v37, %v1038_v2  ;;  %2030 = vst [vmem:[#allocation3 + $0xa0] sm:$0xff] %v1954_v6   ;;  %v1075_v16 = vadd.f32 %v2386_v37, %v1004_v3  ;;  %v1036_v17 = vmul.f32 %v2381_v35, %v577_v34 }
  0xf8   :  { %v1300_v15 = vsel %vm1172_vm10, %v1108_v61, %v1236_v8  ;;  %v1009_v18 = vmul.f32 %v2101_v41, %v2381_v35  ;;  %vm1138_vm11 = vcmp.ge.f32.partialorder %v1074_v9, 0.0  ;;  %v1202_v19 = vmul.f32 0.2, %v1074_v9  ;;  %v2467_v21 = vpop.f32.mrf.mxu0  ;;  %v2469_v22 = vpop.f32.mrf.mxu1 }
  0xf9   :  { %vm1170_vm12 = vcmp.ge.f32.partialorder %v1106_v10, 0.0  ;;  %v1234_v20 = vmul.f32 0.2, %v1106_v10  ;;  %vm1141_vm13 = vcmp.ge.f32.partialorder %v1077_v11, 0.0  ;;  %v1205_v23 = vmul.f32 0.2, %v1077_v11 }
  0xfa   :  { %vm1173_vm14 = vcmp.ge.f32.partialorder %v1109_v12, 0.0  ;;  %v1237_v24 = vmul.f32 0.2, %v1109_v12  ;;  %v1266_v25 = vsel %vm1138_vm11, %v1074_v9, %v1202_v19  ;;  %vm1139_vm15 = vcmp.ge.f32.partialorder %v1075_v16, 0.0  ;;  %v2471_v28 = vpop.f32.mrf.mxu0  ;;  %v2477_v39 = vpop.f32.mrf.mxu1 }
  0xfb   :  { %v1298_v26 = vsel %vm1170_vm12, %v1106_v10, %v1234_v20  ;;  %v1203_v27 = vmul.f32 0.2, %v1075_v16  ;;  %v1269_v29 = vsel %vm1141_vm13, %v1077_v11, %v1205_v23  ;;  %v1107_v31 = vadd.f32 %v2386_v37, %v1036_v17 }
  0xfc   :  { %v1301_v30 = vsel %vm1173_vm14, %v1109_v12, %v1237_v24  ;;  %v1080_v32 = vadd.f32 %v2386_v37, %v1009_v18  ;;  %v1889_v33 = vpack.c.bf16 %v1269_v29, %v1268_v7  ;;  %v1041_v38 = vmul.f32 %v2436_v42, %v2381_v35  ;;  %v2479_v43 = vpop.f32.mrf.mxu0  ;;  %v609_v56 = vpop.f32.mrf.mxu1 }
  0xfd   :  { %v1969_v34 = vpack.c.bf16 %v1301_v30, %v1300_v15  ;;  %v1267_v36 = vsel %vm1139_vm15, %v1075_v16, %v1203_v27  ;;  %vm1171_vm0 = vcmp.ge.f32.partialorder %v1107_v31, 0.0  ;;  %v1235_v41 = vmul.f32 0.2, %v1107_v31 }
  0xfe   :  { %v1884_v40 = vpack.c.bf16 %v1267_v36, %v1266_v25  ;;  %vm1144_vm1 = vcmp.ge.f32.partialorder %v1080_v32, 0.0  ;;  %2017 = vst [vmem:[#allocation3 + $0x38] sm:$0xff] %v1889_v33   ;;  %v1208_v44 = vmul.f32 0.2, %v1080_v32  ;;  %v1112_v45 = vadd.f32 %v2386_v37, %v1041_v38  ;;  %v2109_v61 = vpop.f32.mrf.mxu0 }
  0xff   :  { %2033 = vst [vmem:[#allocation3 + $0xb8] sm:$0xff] %v1969_v34   ;;  %v1007_v46 = vmul.f32 %v2381_v35, %v2440_v50  ;;  %v1039_v47 = vmul.f32 %v2381_v35, %v2442_v51  ;;  %v1299_v42 = vsel %vm1171_vm0, %v1107_v31, %v1235_v41  ;;  %v1010_v48 = vmul.f32 %v2445_v58, %v2381_v35 }
 0x100   :  { %2016 = vst [vmem:[#allocation3 + $0x30] sm:$0xff] %v1884_v40   ;;  %v1042_v49 = vmul.f32 %v2447_v59, %v2381_v35  ;;  %v1008_v52 = vmul.f32 %v2381_v35, %v465_v4  ;;  %v1964_v53 = vpack.c.bf16 %v1299_v42, %v1298_v26  ;;  %v1272_v54 = vsel %vm1144_vm1, %v1080_v32, %v1208_v44  ;;  %v2499_v4 = vpop.f32.mrf.mxu1  ;;  %v2501_v9 = vpop.f32.mrf.mxu0 }
 0x101   :  { %vm1176_vm2 = vcmp.ge.f32.partialorder %v1112_v45, 0.0  ;;  %v1240_v55 = vmul.f32 0.2, %v1112_v45  ;;  %v1078_v50 = vadd.f32 %v2386_v37, %v1007_v46  ;;  %v1110_v57 = vadd.f32 %v2386_v37, %v1039_v47 }
 0x102   :  { %v1081_v51 = vadd.f32 %v2386_v37, %v1010_v48  ;;  %v1113_v60 = vadd.f32 %v2386_v37, %v1042_v49  ;;  %2032 = vst [vmem:[#allocation3 + $0xb0] sm:$0xff] %v1964_v53   ;;  %v1079_v59 = vadd.f32 %v2386_v37, %v1008_v52  ;;  %v1040_v62 = vmul.f32 %v2381_v35, %v2455_v5  ;;  %v622_v20 = vpop.f32.mrf.mxu1  ;;  %v2110_v27 = vpop.f32.mrf.mxu0 }
 0x103   :  { %v1304_v58 = vsel %vm1176_vm2, %v1112_v45, %v1240_v55  ;;  %v1013_v63 = vmul.f32 %v2105_v13, %v2381_v35  ;;  %vm1142_vm3 = vcmp.ge.f32.partialorder %v1078_v50, 0.0  ;;  %v1206_v0 = vmul.f32 0.2, %v1078_v50 }
 0x104   :  { %vm1174_vm4 = vcmp.ge.f32.partialorder %v1110_v57, 0.0  ;;  %v1238_v1 = vmul.f32 0.2, %v1110_v57  ;;  %vm1145_vm5 = vcmp.ge.f32.partialorder %v1081_v51, 0.0  ;;  %v1209_v2 = vmul.f32 0.2, %v1081_v51  ;;  %v2142_v40 = vpop.f32.mrf.mxu1  ;;  %v497_v44 = vpop.f32.mrf.mxu0 }
 0x105   :  { %vm1177_vm6 = vcmp.ge.f32.partialorder %v1113_v60, 0.0  ;;  %v1241_v3 = vmul.f32 0.2, %v1113_v60  ;;  %v1270_v6 = vsel %vm1142_vm3, %v1078_v50, %v1206_v0  ;;  %vm1143_vm7 = vcmp.ge.f32.partialorder %v1079_v59, 0.0 }
 0x106   :  { %v1302_v7 = vsel %vm1174_vm4, %v1110_v57, %v1238_v1  ;;  %v1207_v8 = vmul.f32 0.2, %v1079_v59  ;;  %v1273_v10 = vsel %vm1145_vm5, %v1081_v51, %v1209_v2  ;;  %v1111_v11 = vadd.f32 %v2386_v37, %v1040_v62  ;;  %v625_v53 = vpop.f32.mrf.mxu1  ;;  %v2113_v57 = vpop.f32.mrf.mxu0 }
 0x107   :  { %v1305_v5 = vsel %vm1177_vm6, %v1113_v60, %v1241_v3  ;;  %v1084_v12 = vadd.f32 %v2386_v37, %v1013_v63  ;;  %v1899_v13 = vpack.c.bf16 %v1273_v10, %v1272_v54  ;;  %v1045_v17 = vmul.f32 %v2462_v14, %v2381_v35 }
 0x108   :  { %v1979_v15 = vpack.c.bf16 %v1305_v5, %v1304_v58  ;;  %v1271_v16 = vsel %vm1143_vm7, %v1079_v59, %v1207_v8  ;;  %vm1175_vm8 = vcmp.ge.f32.partialorder %v1111_v11, 0.0  ;;  %v1239_v19 = vmul.f32 0.2, %v1111_v11  ;;  %v2145_v3 = vpop.f32.mrf.mxu1  ;;  %v510_v10 = vpop.f32.mrf.mxu0 }
 0x109   :  { %v1894_v18 = vpack.c.bf16 %v1271_v16, %v1270_v6  ;;  %vm1148_vm9 = vcmp.ge.f32.partialorder %v1084_v12, 0.0  ;;  %2019 = vst [vmem:[#allocation3 + $0x48] sm:$0xff] %v1899_v13   ;;  %v1212_v23 = vmul.f32 0.2, %v1084_v12  ;;  %v1116_v24 = vadd.f32 %v2386_v37, %v1045_v17 }
 0x10a   :  { %2035 = vst [vmem:[#allocation3 + $0xc8] sm:$0xff] %v1979_v15   ;;  %v1011_v25 = vmul.f32 %v2381_v35, %v2467_v21  ;;  %v1043_v26 = vmul.f32 %v2381_v35, %v2469_v22  ;;  %v1303_v29 = vsel %vm1175_vm8, %v1111_v11, %v1239_v19  ;;  %v1014_v14 = vmul.f32 %v2471_v28, %v2381_v35 }
 0x10b   :  { %2018 = vst [vmem:[#allocation3 + $0x40] sm:$0xff] %v1894_v18   ;;  %v1046_v30 = vmul.f32 %v2477_v39, %v2381_v35  ;;  %v1012_v31 = vmul.f32 %v2381_v35, %v2479_v43  ;;  %v1974_v32 = vpack.c.bf16 %v1303_v29, %v1302_v7  ;;  %v1276_v33 = vsel %vm1148_vm9, %v1084_v12, %v1212_v23 }
 0x10c   :  { %vm1180_vm10 = vcmp.ge.f32.partialorder %v1116_v24, 0.0  ;;  %v1244_v34 = vmul.f32 0.2, %v1116_v24  ;;  %v1082_v21 = vadd.f32 %v2386_v37, %v1011_v25  ;;  %v1114_v22 = vadd.f32 %v2386_v37, %v1043_v26  ;;  %v2114_v26 = vpop.f32.mrf.mxu0 }
 0x10d   :  { %v1085_v36 = vadd.f32 %v2386_v37, %v1014_v14  ;;  %v1117_v38 = vadd.f32 %v2386_v37, %v1046_v30  ;;  %2034 = vst [vmem:[#allocation3 + $0xc0] sm:$0xff] %v1974_v32   ;;  %v1083_v39 = vadd.f32 %v2386_v37, %v1012_v31  ;;  %v1044_v41 = vmul.f32 %v2381_v35, %v609_v56 }
 0x10e   :  { %v1308_v28 = vsel %vm1180_vm10, %v1116_v24, %v1244_v34  ;;  %v1017_v43 = vmul.f32 %v2109_v61, %v2381_v35  ;;  %vm1146_vm11 = vcmp.ge.f32.partialorder %v1082_v21, 0.0  ;;  %v1210_v45 = vmul.f32 0.2, %v1082_v21 }
 0x10f   :  { %vm1178_vm12 = vcmp.ge.f32.partialorder %v1114_v22, 0.0  ;;  %v1242_v46 = vmul.f32 0.2, %v1114_v22  ;;  %vm1149_vm13 = vcmp.ge.f32.partialorder %v1085_v36, 0.0  ;;  %v1213_v47 = vmul.f32 0.2, %v1085_v36 }
 0x110   :  { %vm1181_vm14 = vcmp.ge.f32.partialorder %v1117_v38, 0.0  ;;  %v1245_v42 = vmul.f32 0.2, %v1117_v38  ;;  %v1274_v48 = vsel %vm1146_vm11, %v1082_v21, %v1210_v45  ;;  %vm1147_vm15 = vcmp.ge.f32.partialorder %v1083_v39, 0.0 }
 0x111   :  { %v1306_v49 = vsel %vm1178_vm12, %v1114_v22, %v1242_v46  ;;  %v1211_v52 = vmul.f32 0.2, %v1083_v39  ;;  %v1277_v54 = vsel %vm1149_vm13, %v1085_v36, %v1213_v47  ;;  %v1115_v56 = vadd.f32 %v2386_v37, %v1044_v41 }
 0x112   :  { %v1309_v55 = vsel %vm1181_vm14, %v1117_v38, %v1245_v42  ;;  %v1088_v50 = vadd.f32 %v2386_v37, %v1017_v43  ;;  %v1909_v51 = vpack.c.bf16 %v1277_v54, %v1276_v33  ;;  %v1049_v58 = vmul.f32 %v2499_v4, %v2381_v35 }
 0x113   :  { %v1989_v60 = vpack.c.bf16 %v1309_v55, %v1308_v28  ;;  %v1275_v61 = vsel %vm1147_vm15, %v1083_v39, %v1211_v52  ;;  %vm1179_vm0 = vcmp.ge.f32.partialorder %v1115_v56, 0.0  ;;  %v1243_v62 = vmul.f32 0.2, %v1115_v56  ;;  %v513_v28 = vpop.f32.mrf.mxu0 }
 0x114   :  { %v1904_v59 = vpack.c.bf16 %v1275_v61, %v1274_v48  ;;  %vm1152_vm1 = vcmp.ge.f32.partialorder %v1088_v50, 0.0  ;;  %2021 = vst [vmem:[#allocation3 + $0x58] sm:$0xff] %v1909_v51   ;;  %v1216_v63 = vmul.f32 0.2, %v1088_v50  ;;  %v1120_v0 = vadd.f32 %v2386_v37, %v1049_v58 }
 0x115   :  { %2037 = vst [vmem:[#allocation3 + $0xd8] sm:$0xff] %v1989_v60   ;;  %v1015_v1 = vmul.f32 %v2381_v35, %v2501_v9  ;;  %v1047_v2 = vmul.f32 %v2381_v35, %v622_v20  ;;  %v1307_v6 = vsel %vm1179_vm0, %v1115_v56, %v1243_v62  ;;  %v1018_v7 = vmul.f32 %v2110_v27, %v2381_v35  ;;  %v638_v20 = vpop.f32.mrf.mxu1 }
 0x116   :  { %2020 = vst [vmem:[#allocation3 + $0x50] sm:$0xff] %v1904_v59   ;;  %v1050_v4 = vmul.f32 %v2142_v40, %v2381_v35  ;;  %v1016_v8 = vmul.f32 %v2381_v35, %v497_v44  ;;  %v1984_v5 = vpack.c.bf16 %v1307_v6, %v1306_v49  ;;  %vm1184_vm2 = vcmp.ge.f32.partialorder %v1120_v0, 0.0 }
 0x117   :  { %v1248_v11 = vmul.f32 0.2, %v1120_v0  ;;  %v1086_v12 = vadd.f32 %v2386_v37, %v1015_v1  ;;  %v1118_v13 = vadd.f32 %v2386_v37, %v1047_v2  ;;  %v1089_v9 = vadd.f32 %v2386_v37, %v1018_v7  ;;  %v2146_v21 = vpop.f32.mrf.mxu1 }
 0x118   :  { %v1121_v15 = vadd.f32 %v2386_v37, %v1050_v4  ;;  %2036 = vst [vmem:[#allocation3 + $0xd0] sm:$0xff] %v1984_v5   ;;  %v1280_v16 = vsel %vm1152_vm1, %v1088_v50, %v1216_v63  ;;  %v1087_v17 = vadd.f32 %v2386_v37, %v1016_v8  ;;  %v1048_v18 = vmul.f32 %v2381_v35, %v625_v53 }
 0x119   :  { %v1021_v19 = vmul.f32 %v2113_v57, %v2381_v35  ;;  %v1312_v23 = vsel %vm1184_vm2, %v1120_v0, %v1248_v11  ;;  %vm1150_vm3 = vcmp.ge.f32.partialorder %v1086_v12, 0.0  ;;  %v1214_v24 = vmul.f32 0.2, %v1086_v12  ;;  %v641_v53 = vpop.f32.mrf.mxu1 }
 0x11a   :  { %v1246_v25 = vmul.f32 0.2, %v1118_v13  ;;  %vm1153_vm4 = vcmp.ge.f32.partialorder %v1089_v9, 0.0  ;;  %v1217_v27 = vmul.f32 0.2, %v1089_v9  ;;  %vm1185_vm5 = vcmp.ge.f32.partialorder %v1121_v15, 0.0 }
 0x11b   :  { %v1249_v29 = vmul.f32 0.2, %v1121_v15  ;;  %v1278_v14 = vsel %vm1150_vm3, %v1086_v12, %v1214_v24  ;;  %vm1182_vm6 = vcmp.ge.f32.partialorder %v1118_v13, 0.0  ;;  %vm1151_vm7 = vcmp.ge.f32.partialorder %v1087_v17, 0.0 }
 0x11c   :  { %v1215_v30 = vmul.f32 0.2, %v1087_v17  ;;  %v1281_v31 = vsel %vm1153_vm4, %v1089_v9, %v1217_v27  ;;  %v1119_v33 = vadd.f32 %v2386_v37, %v1048_v18  ;;  %v1092_v34 = vadd.f32 %v2386_v37, %v1021_v19 }
 0x11d   :  { %v1313_v32 = vsel %vm1185_vm5, %v1121_v15, %v1249_v29  ;;  %v1919_v22 = vpack.c.bf16 %v1281_v31, %v1280_v16  ;;  %v1053_v40 = vmul.f32 %v2145_v3, %v2381_v35  ;;  %v1310_v39 = vsel %vm1182_vm6, %v1118_v13, %v1246_v25 }
 0x11e   :  { %v1999_v36 = vpack.c.bf16 %v1313_v32, %v1312_v23  ;;  %v1279_v38 = vsel %vm1151_vm7, %v1087_v17, %v1215_v30  ;;  %vm1183_vm8 = vcmp.ge.f32.partialorder %v1119_v33, 0.0  ;;  %v1247_v43 = vmul.f32 0.2, %v1119_v33 }
 0x11f   :  { %v1914_v41 = vpack.c.bf16 %v1279_v38, %v1278_v14  ;;  %2023 = vst [vmem:[#allocation3 + $0x68] sm:$0xff] %v1919_v22   ;;  %v1220_v44 = vmul.f32 0.2, %v1092_v34  ;;  %v1124_v45 = vadd.f32 %v2386_v37, %v1053_v40  ;;  %v1019_v46 = vmul.f32 %v2381_v35, %v510_v10 }
 0x120   :  { %2039 = vst [vmem:[#allocation3 + $0xe8] sm:$0xff] %v1999_v36   ;;  %v1051_v47 = vmul.f32 %v2381_v35, %v638_v20  ;;  %v1311_v42 = vsel %vm1183_vm8, %v1119_v33, %v1247_v43  ;;  %v1022_v48 = vmul.f32 %v2114_v26, %v2381_v35  ;;  %v1054_v49 = vmul.f32 %v2146_v21, %v2381_v35 }
 0x121   :  { %2022 = vst [vmem:[#allocation3 + $0x60] sm:$0xff] %v1914_v41   ;;  %v1020_v52 = vmul.f32 %v2381_v35, %v513_v28  ;;  %v1994_v54 = vpack.c.bf16 %v1311_v42, %v1310_v39  ;;  %vm1156_vm9 = vcmp.ge.f32.partialorder %v1092_v34, 0.0  ;;  %v1252_v55 = vmul.f32 0.2, %v1124_v45 }
 0x122   :  { %v1090_v56 = vadd.f32 %v2386_v37, %v1019_v46  ;;  %v1122_v50 = vadd.f32 %v2386_v37, %v1051_v47  ;;  %v1093_v57 = vadd.f32 %v2386_v37, %v1022_v48  ;;  %v1125_v51 = vadd.f32 %v2386_v37, %v1054_v49 }
 0x123   :  { %2038 = vst [vmem:[#allocation3 + $0xe0] sm:$0xff] %v1994_v54   ;;  %vm1188_vm10 = vcmp.ge.f32.partialorder %v1124_v45, 0.0  ;;  %v1091_v60 = vadd.f32 %v2386_v37, %v1020_v52  ;;  %v1052_v61 = vmul.f32 %v2381_v35, %v641_v53  ;;  %v1284_v58 = vsel %vm1156_vm9, %v1092_v34, %v1220_v44 }
 0x124   :  { %vm1154_vm11 = vcmp.ge.f32.partialorder %v1090_v56, 0.0  ;;  %v1218_v59 = vmul.f32 0.2, %v1090_v56  ;;  %vm1157_vm12 = vcmp.ge.f32.partialorder %v1093_v57, 0.0  ;;  %v1221_v62 = vmul.f32 0.2, %v1093_v57 }
 0x125   :  { %vm1189_vm13 = vcmp.ge.f32.partialorder %v1125_v51, 0.0  ;;  %v1253_v63 = vmul.f32 0.2, %v1125_v51  ;;  %v1316_v0 = vsel %vm1188_vm10, %v1124_v45, %v1252_v55  ;;  %vm1186_vm14 = vcmp.ge.f32.partialorder %v1122_v50, 0.0 }
 0x126   :  { %vm1155_vm15 = vcmp.ge.f32.partialorder %v1091_v60, 0.0  ;;  %v1219_v1 = vmul.f32 0.2, %v1091_v60  ;;  %v1250_v2 = vmul.f32 0.2, %v1122_v50  ;;  %v1285_v3 = vsel %vm1157_vm12, %v1093_v57, %v1221_v62 }
 0x127   :  { %v1317_v6 = vsel %vm1189_vm13, %v1125_v51, %v1253_v63  ;;  %v1123_v7 = vadd.f32 %v2386_v37, %v1052_v61  ;;  %v1282_v4 = vsel %vm1154_vm11, %v1090_v56, %v1218_v59  ;;  %v1929_v8 = vpack.c.bf16 %v1285_v3, %v1284_v58 }
 0x128   :  { %v2009_v10 = vpack.c.bf16 %v1317_v6, %v1316_v0  ;;  %v1283_v35 = vsel %vm1155_vm15, %v1091_v60, %v1219_v1  ;;  %v1314_v12 = vsel %vm1186_vm14, %v1122_v50, %v1250_v2 }
 0x129   :  { %v1924_v5 = vpack.c.bf16 %v1283_v35, %v1282_v4  ;;  %vm1187_vm0 = vcmp.ge.f32.partialorder %v1123_v7, 0.0  ;;  %v1251_v11 = vmul.f32 0.2, %v1123_v7  ;;  %2025 = vst [vmem:[#allocation3 + $0x78] sm:$0xff] %v1929_v8  }
 0x12a   :  { %2041 = vst [vmem:[#allocation3 + $0xf8] sm:$0xff] %v2009_v10  }
 0x12b   :  { %2024 = vst [vmem:[#allocation3 + $0x70] sm:$0xff] %v1924_v5   ;;  %v1315_v13 = vsel %vm1187_vm0, %v1123_v7, %v1251_v11 }
 0x12c   :  { %v2004_v9 = vpack.c.bf16 %v1315_v13, %v1314_v12 }
 0x12e   :  { %2040 = vst [vmem:[#allocation3 + $0xf0] sm:$0xff] %v2004_v9  }
 0x12f   :  { %2202 = shalt.err (!%p2199_p4)
}
 0x130   :  { %s2214_s8 = smov 64   ;;  %s2215_s9 = smov 4  }
 0x131   :  { %1649 = dma.vmem_to_hbm [thread:$0]  %s1644_s2, 4096, %s2568_s4, [#allocation4], %s2214_s8, %s2214_s8, %s2215_s9  }
 0x132   :  { %2211 = dma.done.wait [#allocation4], 4096  }
 0x133   :  { %2212 = vsyncadd [#allocation4], 4294963200 }
 0x134   :  { %1653 = vsyncpa [#allocation4], 1 }

</bundles_post_ra>
